<compile_context>
chip_gen: v7x
topology: tpu7x:2x2x1
jax: 0.10.0
libtpu: 0.0.40
codegen_flags: <defaults>
</compile_context>

<pallas_src>
import jax
import jax.numpy as jnp
from jax.experimental import pallas as pl
from jax.experimental.pallas import tpu as pltpu


def _build_pe(d_model: int, max_len: int = 5000, dtype=jnp.float32) -> jnp.ndarray:
    """Replicates the torch __init__ buffer construction (even d_model)."""
    position = jnp.arange(0, max_len, dtype=jnp.float32)[:, None]          # (max_len, 1)
    div_term = jnp.exp(
        jnp.arange(0, d_model, 2, dtype=jnp.float32)
        * (-jnp.log(jnp.float32(10000.0)) / d_model)
    )                                                                       # (ceil(d/2),)
    angles = position * div_term                                            # (max_len, d/2)
    pe = jnp.zeros((max_len, d_model), dtype=jnp.float32)
    pe = pe.at[:, 0::2].set(jnp.sin(angles))
    # NOTE: for odd d_model the torch module would raise a shape error; here the
    # cos half is truncated instead.  Even d_model matches torch exactly.
    pe = pe.at[:, 1::2].set(jnp.cos(angles)[:, : pe[:, 1::2].shape[1]])
    return pe[None, :, :].astype(dtype)                                     # (1, max_len, d_model)


def _add_pe_kernel(x_ref, pe_ref, o_ref):
    # x_ref:  (B, TILE) slab of activations
    # pe_ref: (1, TILE) slab of positional encodings (broadcast over sublanes)
    # o_ref:  (B, TILE)
    o_ref[...] = x_ref[...] + pe_ref[...]


def _choose_tile(B: int, F: int, itemsize: int) -> int:
    """Lane-dense flat tile: multiple of 128, ~128K x-elems/step, VMEM-bounded."""
    # Target >= 512 rows x 128 lanes of x per grid step for roofline DMA width.
    target = max(128, (131072 // max(B, 1)) // 128 * 128)
    # VMEM guard: double-buffered x, pe, out blocks must stay under ~12 MiB
    # (below every generation's default scoped VMEM, incl. v7x's 64 MiB total).
    vmem_cap = (12 * 1024 * 1024) // (2 * (2 * B + 1) * itemsize)
    tile = max(128, min(target, (vmem_cap // 128) * 128))
    if F <= tile:
        return F          # single full-extent block is always layout-legal
    return tile


def positional_encoding_forward(x: jnp.ndarray, pe: jnp.ndarray) -> jnp.ndarray:
    """x: (B, S, D); pe: (1, max_len, D) in x.dtype. Returns x + pe[:, :S, :]."""
    B, S, D = x.shape
    _, max_len, Dp = pe.shape
    assert D == Dp and S <= max_len

    F = S * D
    x_flat = x.reshape(B, F)                   # free row-major view
    pe_flat = pe.reshape(1, max_len * D)       # free row-major view; prefix == pe[:, :S, :]

    tile = _choose_tile(B, F, jnp.dtype(x.dtype).itemsize)
    grid = (pl.cdiv(F, tile),)

    out_flat = pl.pallas_call(
        _add_pe_kernel,
        out_shape=jax.ShapeDtypeStruct((B, F), x.dtype),
        grid_spec=pltpu.PrefetchScalarGridSpec(
            num_scalar_prefetch=0,
            grid=grid,
            in_specs=[
                pl.BlockSpec((B, tile), lambda t: (0, t)),   # x slab tile
                pl.BlockSpec((1, tile), lambda t: (0, t)),   # pe window tile (handles :S)
            ],
            out_specs=pl.BlockSpec((B, tile), lambda t: (0, t)),
        ),
        compiler_params=pltpu.CompilerParams(
            dimension_semantics=("parallel",),
        ),
    )(x_flat, pe_flat)

    return out_flat.reshape(B, S, D)


if __name__ == "__main__":
    # Small shapes consistent with the module: batch=2, seq=8, d_model=32.
    B, S, D = 2, 8, 32
    MAX_LEN = 64  # small max_len for the synthetic buffer (>= S)

    key = jax.random.PRNGKey(0)
    x = jax.random.normal(key, (B, S, D), dtype=jnp.float32)

    # "register_buffer": built once at setup, already in the activation dtype.
    pe = _build_pe(D, max_len=MAX_LEN, dtype=x.dtype)

    fwd = jax.jit(positional_encoding_forward)
    out = fwd(x, pe)
    out = jax.block_until_ready(out)

    # Reference check in plain JAX.
    ref = x + pe[:, :S, :]
    assert out.shape == (B, S, D)
    assert jnp.allclose(out, ref, atol=1e-6), "mismatch vs reference"

    print("KERNEL_OK")
</pallas_src>

<mosaic_0001>
module attributes {stable_mosaic.version = 11 : i64} {
  func.func @_add_pe_kernel(%arg0: i32, %arg1: memref<2x256xf32, #tpu.memory_space<vmem>>, %arg2: memref<1x256xf32, #tpu.memory_space<vmem>>, %arg3: memref<2x256xf32, #tpu.memory_space<vmem>>) attributes {dimension_semantics = [#tpu.dimension_semantics<parallel>], iteration_bounds = array<i64: 1>, scalar_prefetch = 0 : i64, scratch_operands = 0 : i64, tpu.core_type = #tpu.core_type<tc>, window_params = [{transform_indices = @transform_0, window_bounds = array<i64: 2, 256>}, {transform_indices = @transform_1, window_bounds = array<i64: 1, 256>}, {transform_indices = @transform_2, window_bounds = array<i64: 2, 256>}]} {
    %c0 = arith.constant 0 : index
    %c0_0 = arith.constant 0 : index
    %0 = vector.load %arg1[%c0, %c0_0] : memref<2x256xf32, #tpu.memory_space<vmem>>, vector<2x256xf32>
    %c0_1 = arith.constant 0 : index
    %c0_2 = arith.constant 0 : index
    %1 = vector.load %arg2[%c0_1, %c0_2] : memref<1x256xf32, #tpu.memory_space<vmem>>, vector<1x256xf32>
    %2 = vector.broadcast %1 : vector<1x256xf32> to vector<2x256xf32>
    %3 = arith.addf %0, %2 : vector<2x256xf32>
    %c0_3 = arith.constant 0 : index
    %c0_4 = arith.constant 0 : index
    %4 = vector.load %arg3[%c0_3, %c0_4] : memref<2x256xf32, #tpu.memory_space<vmem>>, vector<2x256xf32>
    tpu.vector_store %arg3[%c0_3, %c0_4], %3 {strides = array<i32>} : memref<2x256xf32, #tpu.memory_space<vmem>>, vector<2x256xf32>,
    return
  }
  func.func @transform_0(%arg0: i32) -> (i32, i32) {
    %c0_i32 = arith.constant 0 : i32
    %c0_i32_0 = arith.constant 0 : i32
    return %c0_i32, %arg0 : i32, i32
  }
  func.func @transform_1(%arg0: i32) -> (i32, i32) {
    %c0_i32 = arith.constant 0 : i32
    %c0_i32_0 = arith.constant 0 : i32
    return %c0_i32, %arg0 : i32, i32
  }
  func.func @transform_2(%arg0: i32) -> (i32, i32) {
    %c0_i32 = arith.constant 0 : i32
    %c0_i32_0 = arith.constant 0 : i32
    return %c0_i32, %arg0 : i32, i32
  }
}

</mosaic_0001>

<bundles_post_ra>
// kernel: positional_encoding_forward.1
= control target key start
LH: loop header
LB: loop body
LE: loop exit
PB: predicated region body
PF: predicated region fallthrough
CT: control target
= control target key end

     0   :  { %v14_v0 = vlaneseq  ;;  %v38_v1 = vmov 1983009808   ;;  %s63_s1 = inlined_call_operand.vmem [shape: f32[1,2048], index: 1, kind: input, shape index: {}]   ;;  %s64_s0 = inlined_call_operand.vmem [shape: f32[2,256], index: 0, kind: input, shape index: {}]   ;;  %s65_s2 = inlined_call_operand.vmem [shape: f32[2,256], index: 2, kind: output, shape index: {}]  }
   0x1   :  { %v24_v2 = vunpack.c.l.s4 %v38_v1  ;;  %v12_v4 = vld [vmem:[%s63_s1] sm:$0x3] }
   0x2   :  { %v15_v3 = vshrl.u32 %v14_v0, 7  ;;  %v11_v12 = vld [vmem:[%s64_s0] sm:$0xf] }
   0x3   :  { %v25_v5 = vunpack.c.0.s8 %v24_v2 }
   0x4   :  { %v16_v6 = vsub.s32 0, %v15_v3  ;;  %v20_v7 = vsub.s32 1, %v15_v3 }
   0x5   :  { %v28_v10 = vsub.s32 %v25_v5, %v15_v3 }
   0x6   :  { %v17_v8 = vrot.slane %v12_v4, %v16_v6  ;;  %v21_v9 = vrot.slane %v12_v4, %v20_v7 }
   0x8   :  { %v22_v11 = vcombine.low %v17_v8, %v21_v9 }
   0xa   :  { %v29_v13 = vrot.slane %v22_v11, %v28_v10 }
   0xc   :  { %v31_v14 = vadd.f32 %v29_v13, %v11_v12 }
   0xe   :  { %32 = vst [vmem:[%s65_s2] sm:$0xf] %v31_v14 }

</bundles_post_ra>
